<compile_context>
chip_gen: v7x
topology: tpu7x:2x2x1
jax: 0.10.0
libtpu: 0.0.40
codegen_flags: <defaults>
</compile_context>

<pallas_src>
import jax
import jax.numpy as jnp
from jax import lax
from jax.experimental import pallas as pl
from jax.experimental.pallas import tpu as pltpu


_SQRT_HALF = 0.7071067811865476
_MC = 128        # inner row-chunk size (keeps mc x d_proj f32 intermediates in vregs)
_LANE = 128      # lane-dense output width (n_out is zero-padded to this)


def _gelu_exact(x):
    # F.gelu(x) with approximate='none': 0.5 * x * (1 + erf(x / sqrt(2)))
    return 0.5 * x * (1.0 + lax.erf(x * _SQRT_HALF))


def _round_up(x, m):
    return (x + m - 1) // m * m


def mlp_kernel(x_ref,
               w1_ref, w2_ref, w3_ref, w4_ref,
               bvec_ref, b4_ref,
               o_ref):
    # x tile and all weights are bf16; biases / BN scale are f32; MXU accumulates f32.
    b1 = bvec_ref[0:1, :]                # (1, d_proj) f32
    b2 = bvec_ref[1:2, :]
    b3 = bvec_ref[2:3, :]
    bn_scale = bvec_ref[3:4, :]          # eval-mode BN scale (shift folded into b4)
    b4 = b4_ref[...]                     # (1, _LANE) f32, BN shift + fc4 bias, zero-padded

    tb = x_ref.shape[0]
    # Static inner chunk loop over rows: per-chunk intermediates stay in vregs
    # instead of round-tripping (tb x d_proj) f32 arrays through VMEM between dots.
    for start in range(0, tb, _MC):
        mc = min(_MC, tb - start)
        rows = pl.ds(start, mc)          # static start/size -> free slice
        x = x_ref[rows, :]                                                  # (mc, d_in) bf16

        # fc1 (+ dropout1: identity in eval mode)
        h1 = jnp.dot(x, w1_ref[...], preferred_element_type=jnp.float32) + b1

        # gelu(h + fc2(h)) -- elementwise math stays f32 (v5e has no bf16 VPU/EUP)
        h2 = jnp.dot(h1.astype(jnp.bfloat16), w2_ref[...],
                     preferred_element_type=jnp.float32) + b2
        h = _gelu_exact(h1 + h2)

        # dropout2(h + fc3(h)) -- dropout identity in eval mode
        h3 = jnp.dot(h.astype(jnp.bfloat16), w3_ref[...],
                     preferred_element_type=jnp.float32) + b3
        h = (h + h3) * bn_scale          # BatchNorm1d eval-mode scale (f32)

        # fc4 with BN shift folded into b4; output columns padded to 128 lanes
        o_ref[rows, :] = (jnp.dot(h.astype(jnp.bfloat16), w4_ref[...],
                                  preferred_element_type=jnp.float32)
                          + b4).astype(o_ref.dtype)


def _choose_tiling(B, tb_max=1024):
    """Pick (tile_rows, padded_batch).

    Pads the batch only to a multiple of 16 (bf16 sublane pack), guarantees at
    least 2 grid steps when possible (v7x megacore sharding of the "parallel"
    axis), and caps per-step rows at tb_max to amortize per-step overhead
    without creating large padding waste.
    """
    Bp = _round_up(B, 16)
    if Bp <= 16:
        return Bp, Bp                               # tiny batch: single step
    n_steps = max(2, -(-Bp // tb_max))
    tb = _round_up(-(-Bp // n_steps), 16)
    return tb, n_steps * tb


def mlp_forward(x, params, *, tb_max=1024):
    B, d_in = x.shape
    w1, b1, w2, b2, w3, b3, w4, b4, gamma, beta, rmean, rvar = params
    d_proj = w1.shape[1]
    n_out = w4.shape[1]
    n_pad = _round_up(n_out, _LANE)

    # Eval-mode BatchNorm:  bn(h) = h * s + t,   s = gamma*rsqrt(var+eps), t = beta - mean*s
    # The scale s is applied in f32 inside the kernel; the shift is folded into
    # the fc4 bias:  bn(h) @ w4 + b4 = (h*s) @ w4 + (t @ w4 + b4).
    eps = jnp.float32(1e-5)
    s = gamma * lax.rsqrt(rvar + eps)                       # (1, d_proj) f32
    t = beta - rmean * s                                    # (1, d_proj) f32
    b4_full = b4 + t @ w4                                   # (1, n_out) f32

    # bf16 MXU operands (f32 accumulation inside the kernel); fc4 padded to 128 lanes.
    w1b = w1.astype(jnp.bfloat16)
    w2b = w2.astype(jnp.bfloat16)
    w3b = w3.astype(jnp.bfloat16)
    w4b = jnp.pad(w4, ((0, 0), (0, n_pad - n_out))).astype(jnp.bfloat16)
    b4p = jnp.pad(b4_full, ((0, 0), (0, n_pad - n_out)))    # (1, n_pad) f32
    bvec = jnp.concatenate([b1, b2, b3, s], axis=0)         # (4, d_proj) f32

    tb, Bp = _choose_tiling(B, tb_max)
    x_p = x.astype(jnp.bfloat16)
    if Bp != B:
        x_p = jnp.pad(x_p, ((0, Bp - B), (0, 0)))

    full = lambda shape: pl.BlockSpec(shape, lambda i: (0,) * len(shape))

    flops = 2 * Bp * (d_in * d_proj + 2 * d_proj * d_proj + d_proj * n_pad)
    bytes_accessed = (Bp * d_in * 2
                      + (d_in * d_proj + 2 * d_proj * d_proj + d_proj * n_pad) * 2
                      + (4 * d_proj + n_pad) * 4
                      + Bp * n_pad * 4)
    cost = pl.CostEstimate(flops=int(flops),
                           transcendentals=int(Bp * d_proj),
                           bytes_accessed=int(bytes_accessed))

    out = pl.pallas_call(
        mlp_kernel,
        out_shape=jax.ShapeDtypeStruct((Bp, n_pad), jnp.float32),
        grid_spec=pltpu.PrefetchScalarGridSpec(
            num_scalar_prefetch=0,
            grid=(Bp // tb,),
            in_specs=[
                pl.BlockSpec((tb, d_in), lambda i: (i, 0)),   # x tile (streamed)
                full((d_in, d_proj)),                         # fc1 weight (resident)
                full((d_proj, d_proj)),                       # fc2 weight
                full((d_proj, d_proj)),                       # fc3 weight
                full((d_proj, n_pad)),                        # fc4 weight (lane-padded)
                full((4, d_proj)),                            # stacked b1,b2,b3, BN scale
                full((1, n_pad)),                             # fc4 bias + BN shift (padded)
            ],
            out_specs=pl.BlockSpec((tb, n_pad), lambda i: (i, 0)),
        ),
        compiler_params=pltpu.CompilerParams(
            dimension_semantics=("parallel",)),
        cost_estimate=cost,
    )(x_p, w1b, w2b, w3b, w4b, bvec, b4p)
    return out[:B, :n_out]


def init_params(key, input_dim, proj_dim):
    ks = jax.random.split(key, 8)

    def linear(kw, kb, fan_in, fan_out):
        # PyTorch nn.Linear default init: U(-1/sqrt(fan_in), 1/sqrt(fan_in))
        bound = 1.0 / jnp.sqrt(jnp.float32(fan_in))
        w = jax.random.uniform(kw, (fan_in, fan_out), jnp.float32, -bound, bound)
        b = jax.random.uniform(kb, (1, fan_out), jnp.float32, -bound, bound)
        return w, b

    w1, b1 = linear(ks[0], ks[1], input_dim, proj_dim)
    w2, b2 = linear(ks[2], ks[3], proj_dim, proj_dim)
    w3, b3 = linear(ks[4], ks[5], proj_dim, proj_dim)
    w4, b4 = linear(ks[6], ks[7], proj_dim, 9)

    gamma = jnp.ones((1, proj_dim), jnp.float32)   # BatchNorm1d affine init
    beta = jnp.zeros((1, proj_dim), jnp.float32)
    rmean = jnp.zeros((1, proj_dim), jnp.float32)  # running stats at init
    rvar = jnp.ones((1, proj_dim), jnp.float32)

    return (w1, b1, w2, b2, w3, b3, w4, b4, gamma, beta, rmean, rvar)


def mlp_reference(x, params):
    # Pure-JAX f32 reference of the same eval-mode forward pass.
    w1, b1, w2, b2, w3, b3, w4, b4, gamma, beta, rmean, rvar = params
    h = x @ w1 + b1
    h = _gelu_exact(h + (h @ w2 + b2))
    h = h + (h @ w3 + b3)
    h = (h - rmean) * lax.rsqrt(rvar + 1e-5) * gamma + beta
    return (h @ w4 + b4).reshape(-1, 9)


if __name__ == "__main__":
    input_dim, proj_dim = 32, 128
    batch = 64

    key = jax.random.PRNGKey(0)
    kx, kp = jax.random.split(key)
    x = jax.random.normal(kx, (batch, input_dim), jnp.float32)
    params = init_params(kp, input_dim, proj_dim)

    out = mlp_forward(x, params)          # grid=(2,) here -> both v7x TCs get work
    out = jax.block_until_ready(out)

    ref = mlp_reference(x, params)
    assert out.shape == (batch, 9), out.shape
    # bf16 MXU operands with f32 accumulation -> loosen tolerance vs. f32 reference.
    assert jnp.allclose(out, ref, atol=5e-2, rtol=5e-2), "mismatch vs reference"

    print("KERNEL_OK")
</pallas_src>

<mosaic_0001>
module attributes {stable_mosaic.version = 11 : i64} {
  func.func @mlp_kernel(%arg0: i32, %arg1: memref<32x32xbf16, #tpu.memory_space<vmem>>, %arg2: memref<32x128xbf16, #tpu.memory_space<vmem>>, %arg3: memref<128x128xbf16, #tpu.memory_space<vmem>>, %arg4: memref<128x128xbf16, #tpu.memory_space<vmem>>, %arg5: memref<128x128xbf16, #tpu.memory_space<vmem>>, %arg6: memref<4x128xf32, #tpu.memory_space<vmem>>, %arg7: memref<1x128xf32, #tpu.memory_space<vmem>>, %arg8: memref<32x128xf32, #tpu.memory_space<vmem>>) attributes {dimension_semantics = [#tpu.dimension_semantics<parallel>], iteration_bounds = array<i64: 2>, scalar_prefetch = 0 : i64, scratch_operands = 0 : i64, tpu.core_type = #tpu.core_type<tc>, window_params = [{transform_indices = @transform_0, window_bounds = array<i64: 32, 32>}, {pipeline_mode = #tpu.pipeline_mode<synchronous>, transform_indices = @transform_1, window_bounds = array<i64: 32, 128>}, {pipeline_mode = #tpu.pipeline_mode<synchronous>, transform_indices = @transform_2, window_bounds = array<i64: 128, 128>}, {pipeline_mode = #tpu.pipeline_mode<synchronous>, transform_indices = @transform_3, window_bounds = array<i64: 128, 128>}, {pipeline_mode = #tpu.pipeline_mode<synchronous>, transform_indices = @transform_4, window_bounds = array<i64: 128, 128>}, {pipeline_mode = #tpu.pipeline_mode<synchronous>, transform_indices = @transform_5, window_bounds = array<i64: 4, 128>}, {pipeline_mode = #tpu.pipeline_mode<synchronous>, transform_indices = @transform_6, window_bounds = array<i64: 1, 128>}, {transform_indices = @transform_7, window_bounds = array<i64: 32, 128>}]} {
    %c0 = arith.constant 0 : index
    %c0_0 = arith.constant 0 : index
    %0 = vector.load %arg6[%c0, %c0_0] : memref<4x128xf32, #tpu.memory_space<vmem>>, vector<1x128xf32>
    %c1 = arith.constant 1 : index
    %c0_1 = arith.constant 0 : index
    %1 = vector.load %arg6[%c1, %c0_1] : memref<4x128xf32, #tpu.memory_space<vmem>>, vector<1x128xf32>
    %c2 = arith.constant 2 : index
    %c0_2 = arith.constant 0 : index
    %2 = vector.load %arg6[%c2, %c0_2] : memref<4x128xf32, #tpu.memory_space<vmem>>, vector<1x128xf32>
    %c3 = arith.constant 3 : index
    %c0_3 = arith.constant 0 : index
    %3 = vector.load %arg6[%c3, %c0_3] : memref<4x128xf32, #tpu.memory_space<vmem>>, vector<1x128xf32>
    %c0_4 = arith.constant 0 : index
    %c0_5 = arith.constant 0 : index
    %4 = vector.load %arg7[%c0_4, %c0_5] : memref<1x128xf32, #tpu.memory_space<vmem>>, vector<1x128xf32>
    %c0_6 = arith.constant 0 : index
    %c0_7 = arith.constant 0 : index
    %5 = vector.load %arg1[%c0_6, %c0_7] : memref<32x32xbf16, #tpu.memory_space<vmem>>, vector<32x32xbf16>
    %c0_8 = arith.constant 0 : index
    %c0_9 = arith.constant 0 : index
    %6 = vector.load %arg2[%c0_8, %c0_9] : memref<32x128xbf16, #tpu.memory_space<vmem>>, vector<32x128xbf16>
    %cst = arith.constant dense<0.000000e+00> : vector<32x128xf32>
    %7 = tpu.matmul %5, %6, %cst {dimension_numbers = #tpu.dot_dimension_numbers<[1], [0], [0], [1], [0, 0, 1, 1], [], []>} : vector<32x32xbf16>, vector<32x128xbf16>, vector<32x128xf32> -> vector<32x128xf32>
    %8 = vector.broadcast %0 : vector<1x128xf32> to vector<32x128xf32>
    %9 = arith.addf %7, %8 : vector<32x128xf32>
    %10 = arith.truncf %9 : vector<32x128xf32> to vector<32x128xbf16>
    %c0_10 = arith.constant 0 : index
    %c0_11 = arith.constant 0 : index
    %11 = vector.load %arg3[%c0_10, %c0_11] : memref<128x128xbf16, #tpu.memory_space<vmem>>, vector<128x128xbf16>
    %cst_12 = arith.constant dense<0.000000e+00> : vector<32x128xf32>
    %12 = tpu.matmul %10, %11, %cst_12 {dimension_numbers = #tpu.dot_dimension_numbers<[1], [0], [0], [1], [0, 0, 1, 1], [], []>} : vector<32x128xbf16>, vector<128x128xbf16>, vector<32x128xf32> -> vector<32x128xf32>
    %13 = vector.broadcast %1 : vector<1x128xf32> to vector<32x128xf32>
    %14 = arith.addf %12, %13 : vector<32x128xf32>
    %15 = arith.addf %9, %14 : vector<32x128xf32>
    %cst_13 = arith.constant 5.000000e-01 : f32
    %16 = vector.broadcast %cst_13 : f32 to vector<32x128xf32>
    %17 = arith.mulf %16, %15 : vector<32x128xf32>
    %cst_14 = arith.constant 0.707106769 : f32
    %18 = vector.broadcast %cst_14 : f32 to vector<32x128xf32>
    %19 = arith.mulf %15, %18 : vector<32x128xf32>
    %20 = math.erf %19 : vector<32x128xf32>
    %cst_15 = arith.constant 1.000000e+00 : f32
    %21 = vector.broadcast %cst_15 : f32 to vector<32x128xf32>
    %22 = arith.addf %21, %20 : vector<32x128xf32>
    %23 = arith.mulf %17, %22 : vector<32x128xf32>
    %24 = arith.truncf %23 : vector<32x128xf32> to vector<32x128xbf16>
    %c0_16 = arith.constant 0 : index
    %c0_17 = arith.constant 0 : index
    %25 = vector.load %arg4[%c0_16, %c0_17] : memref<128x128xbf16, #tpu.memory_space<vmem>>, vector<128x128xbf16>
    %cst_18 = arith.constant dense<0.000000e+00> : vector<32x128xf32>
    %26 = tpu.matmul %24, %25, %cst_18 {dimension_numbers = #tpu.dot_dimension_numbers<[1], [0], [0], [1], [0, 0, 1, 1], [], []>} : vector<32x128xbf16>, vector<128x128xbf16>, vector<32x128xf32> -> vector<32x128xf32>
    %27 = vector.broadcast %2 : vector<1x128xf32> to vector<32x128xf32>
    %28 = arith.addf %26, %27 : vector<32x128xf32>
    %29 = arith.addf %23, %28 : vector<32x128xf32>
    %30 = vector.broadcast %3 : vector<1x128xf32> to vector<32x128xf32>
    %31 = arith.mulf %29, %30 : vector<32x128xf32>
    %32 = arith.truncf %31 : vector<32x128xf32> to vector<32x128xbf16>
    %c0_19 = arith.constant 0 : index
    %c0_20 = arith.constant 0 : index
    %33 = vector.load %arg5[%c0_19, %c0_20] : memref<128x128xbf16, #tpu.memory_space<vmem>>, vector<128x128xbf16>
    %cst_21 = arith.constant dense<0.000000e+00> : vector<32x128xf32>
    %34 = tpu.matmul %32, %33, %cst_21 {dimension_numbers = #tpu.dot_dimension_numbers<[1], [0], [0], [1], [0, 0, 1, 1], [], []>} : vector<32x128xbf16>, vector<128x128xbf16>, vector<32x128xf32> -> vector<32x128xf32>
    %35 = vector.broadcast %4 : vector<1x128xf32> to vector<32x128xf32>
    %36 = arith.addf %34, %35 : vector<32x128xf32>
    %c0_22 = arith.constant 0 : index
    %c0_23 = arith.constant 0 : index
    %37 = vector.load %arg8[%c0_22, %c0_23] : memref<32x128xf32, #tpu.memory_space<vmem>>, vector<32x128xf32>
    tpu.vector_store %arg8[%c0_22, %c0_23], %36 {strides = array<i32>} : memref<32x128xf32, #tpu.memory_space<vmem>>, vector<32x128xf32>,
    return
  }
  func.func @transform_0(%arg0: i32) -> (i32, i32) {
    %c0_i32 = arith.constant 0 : i32
    %c0_i32_0 = arith.constant 0 : i32
    return %arg0, %c0_i32 : i32, i32
  }
  func.func @transform_1(%arg0: i32) -> (i32, i32) {
    %c0_i32 = arith.constant 0 : i32
    %c0_i32_0 = arith.constant 0 : i32
    %c0_i32_1 = arith.constant 0 : i32
    return %c0_i32, %c0_i32_0 : i32, i32
  }
  func.func @transform_2(%arg0: i32) -> (i32, i32) {
    %c0_i32 = arith.constant 0 : i32
    %c0_i32_0 = arith.constant 0 : i32
    %c0_i32_1 = arith.constant 0 : i32
    return %c0_i32, %c0_i32_0 : i32, i32
  }
  func.func @transform_3(%arg0: i32) -> (i32, i32) {
    %c0_i32 = arith.constant 0 : i32
    %c0_i32_0 = arith.constant 0 : i32
    %c0_i32_1 = arith.constant 0 : i32
    return %c0_i32, %c0_i32_0 : i32, i32
  }
  func.func @transform_4(%arg0: i32) -> (i32, i32) {
    %c0_i32 = arith.constant 0 : i32
    %c0_i32_0 = arith.constant 0 : i32
    %c0_i32_1 = arith.constant 0 : i32
    return %c0_i32, %c0_i32_0 : i32, i32
  }
  func.func @transform_5(%arg0: i32) -> (i32, i32) {
    %c0_i32 = arith.constant 0 : i32
    %c0_i32_0 = arith.constant 0 : i32
    %c0_i32_1 = arith.constant 0 : i32
    return %c0_i32, %c0_i32_0 : i32, i32
  }
  func.func @transform_6(%arg0: i32) -> (i32, i32) {
    %c0_i32 = arith.constant 0 : i32
    %c0_i32_0 = arith.constant 0 : i32
    %c0_i32_1 = arith.constant 0 : i32
    return %c0_i32, %c0_i32_0 : i32, i32
  }
  func.func @transform_7(%arg0: i32) -> (i32, i32) {
    %c0_i32 = arith.constant 0 : i32
    %c0_i32_0 = arith.constant 0 : i32
    return %arg0, %c0_i32 : i32, i32
  }
}

</mosaic_0001>

<bundles_post_ra>
// kernel: tpu_custom_call.1
= control target key start
LH: loop header
LB: loop body
LE: loop exit
PB: predicated region body
PF: predicated region fallthrough
CT: control target
= control target key end

     0   :  { %12 = vsyncpa [#allocation3], 0  ;;  %s1628_s0 = inlined_call_operand.vmem [shape: bf16[64,32], index: 0, kind: input, shape index: {}]   ;;  %s1629_s1 = inlined_call_operand.vmem [shape: bf16[32,128], index: 1, kind: input, shape index: {}]   ;;  %s1630_s2 = inlined_call_operand.hbm [shape: bf16[128,128], index: 2, kind: input, shape index: {}]   ;;  %s1631_s3 = inlined_call_operand.hbm [shape: bf16[128,128], index: 3, kind: input, shape index: {}]   ;;  %s1632_s4 = inlined_call_operand.hbm [shape: bf16[128,128], index: 4, kind: input, shape index: {}]   ;;  %s1633_s5 = inlined_call_operand.vmem [shape: f32[4,128], index: 5, kind: input, shape index: {}]   ;;  %s1634_s6 = inlined_call_operand.vmem [shape: f32[1,128], index: 6, kind: input, shape index: {}]   ;;  %s1635_s7 = inlined_call_operand.hbm [shape: f32[64,128], index: 7, kind: output, shape index: {}]  }
   0x1   :  { %13 = vsyncpa [#allocation6], 0 }
   0x2   :  { %14 = vsyncpa [#allocation4], 0 }
   0x3   :  { %16 = vsyncpa [#allocation4 + $0x1], 0  ;;  %s1396_s24 = smov 0   ;;  %s1398_s25 = smov 0  }
   0x4   :  { %s1400_s26 = smov 0   ;;  %s1402_s27 = smov 0  }
   0x5 LB: > { %1642 = sst [smem:[#allocation12_spill]] %s1342_s26  ;;  %s1417_s28 = sadd.s32 4294967295, %s1346_s27   ;;  %s1346_s27 = sphi %s1402_s27, %s1657_s27   ;;  %s1342_s26 = sphi %s1400_s26, %s1659_s26   ;;  %s1338_s25 = sphi %s1398_s25, %s1661_s25   ;;  %s1334_s24 = sphi %s1396_s24, %s1660_s24  }
   0x6   : > { %s926_s29 = sadd.s32 4294967294, %s1346_s27   ;;  %s1421_s30 = sadd.s32 1, %s1346_s27  }
   0x7   : > { %1643 = sst [smem:[#allocation13_spill]] %s1421_s30  ;;  %s181_s8 = sadd.s32 1, %s1342_s26 }
   0x8   : > { %s178_s9 = ssub.s32 %s1346_s27, %s1421_s30  ;;  %p191_p0 = scmp.ne.s32.totalorder %s1342_s26, %s1338_s25 }
   0x9   : > { %p179_p1 = scmp.eq.s32.totalorder %s178_s9, 0  ;;  %p192_p2 = scmp.eq.s32.totalorder %s1417_s28, 1 }
   0xa   : > { %p197_p3 = scmp.ne.s32.totalorder %s1338_s25, %s1334_s24  ;;  %p198_p4 = scmp.eq.s32.totalorder %s926_s29, 1 }
   0xb   : > { %s1432_s10 = scalar_select %p179_p1, %s1342_s26, %s181_s8  }
   0xc   : > { %p1434_p5 = por %p192_p2, %p191_p0  ;;  %p1438_p6 = por %p198_p4, %p197_p3 }
   0xd   : > { %1644 = sst [smem:[#allocation14_spill]] %s1432_s10  ;;  %p927_p7 = scmp.ge.s32.totalorder %s1346_s27, 1 }
   0xe   : > { %s1645_s11 = scalar_select %p1434_p5, 1, 0 }
   0xf   : > { %s1646_s12 = scalar_select %p1438_p6, 1, 0 }
  0x10   : > { %p205_p8 = scmp.lt.s32.totalorder %s1346_s27, 3  ;;  %p1636_p9 = scmp.eq.s32.totalorder %s1417_s28, 0 }
  0x11   : > { %s1348_s14 = smov [#allocation5]   ;;  %s1349_s17 = smov [#allocation2]  }
  0x12   : > { %p1445_p10 = pnand %p927_p7, %p205_p8  ;;  %s233_s15 = sshll.u32 %s1348_s14, 4  ;;  %s1451_s15 = int_to_ptr.vmem [resolvable:$true] %s233_s15 }
  0x13   : > { %s220_s18 = sshll.u32 %s1349_s17, 4  ;;  %s1350_s19 = smov [#allocation7]   ;;  %s1459_s18 = int_to_ptr.vmem [resolvable:$true] %s220_s18 }
  0x14   : > { %s1647_s13 = scalar_select %p1445_p10, 1, 0 }
  0x15   : > { %p1096_p11 = pneg %p1445_p10  ;;  %s1461_s20 = sshll.u32 %s1350_s19, 4  ;;  %s247_s20 = int_to_ptr.vmem [resolvable:$true] %s1461_s20 }
  0x16   : > { %s1192_s23 = scalar_lea.hbm %s1631_s3, 1024 }
  0x17   : > { %p1455_p12 = pnand %p1636_p9, %p1096_p11  ;;  %p1193_p13 = scmp.ne.s32.totalorder %s1631_s3, %s1192_s23 }
  0x18   : > { %p1199_p3 = scmp.lt.u32.totalorder %s1192_s23, %s1631_s3 }
  0x19   : > { %p1471_p0 = pneg %p1455_p12 }
  0x1b   : > { %p1195_p1 = pnand %p1471_p0, %p1193_p13 }
  0x1d   : > { %p1196_p2 = pneg %p1195_p1 }
  0x1f   : > { %p1201_p4 = pnand %p1199_p3, %p1196_p2 }
  0x21   : > { %1204 = shalt.err (!%p1201_p4)
}
  0x22   : > { %s1205_s19 = scalar_lea.vmem %s1451_s15, 1024  ;;  %p1213_p9 = scmp.lt.s32.totalorder %s1451_s15, %s1451_s15 }
  0x23   : > { %p1206_p7 = scmp.ne.s32.totalorder %s1451_s15, %s1205_s19  ;;  %p1214_p6 = scmp.lt.s32.totalorder %s1205_s19, %s1205_s19 }
  0x25   : > { %p1208_p8 = pnand %p1206_p7, %p1471_p0  ;;  %p1215_p13 = por %p1214_p6, %p1213_p9 }
  0x27   : > { %p1209_p11 = pneg %p1208_p8 }
  0x29   : > { %p1216_p1 = pnand %p1215_p13, %p1209_p11 }
  0x2b   : > { %1219 = shalt.err (!%p1216_p1)
}
  0x2c   : > { %s1351_s21 = smov 64   ;;  %s1352_s22 = smov 4  }
  0x2d   : > { %1102 = dma.hbm_to_vmem [thread:$0]  (!%p1455_p12), %s1631_s3, 1024, %s1451_s15, [#allocation6], %s1351_s21, %s1351_s21, %s1352_s22  }
  0x2e   : > { %s1220_s17 = scalar_lea.hbm %s1630_s2, 1024 }
  0x2f   : > { %p1221_p6 = scmp.ne.s32.totalorder %s1630_s2, %s1220_s17  ;;  %p1227_p3 = scmp.lt.u32.totalorder %s1220_s17, %s1630_s2 }
  0x31   : > { %p1223_p9 = pnand %p1221_p6, %p1471_p0 }
  0x33   : > { %p1224_p2 = pneg %p1223_p9 }
  0x35   : > { %p1229_p4 = pnand %p1227_p3, %p1224_p2 }
  0x37   : > { %1232 = shalt.err (!%p1229_p4)
}
  0x38   : > { %s1233_s15 = scalar_lea.vmem %s1459_s18, 1024  ;;  %p1241_p13 = scmp.lt.s32.totalorder %s1459_s18, %s1459_s18 }
  0x39   : > { %p1234_p7 = scmp.ne.s32.totalorder %s1459_s18, %s1233_s15  ;;  %p1242_p1 = scmp.lt.s32.totalorder %s1233_s15, %s1233_s15 }
  0x3b   : > { %p1236_p8 = pnand %p1234_p7, %p1471_p0  ;;  %p1243_p6 = por %p1242_p1, %p1241_p13 }
  0x3d   : > { %p1237_p11 = pneg %p1236_p8 }
  0x3f   : > { %p1244_p9 = pnand %p1243_p6, %p1237_p11 }
  0x41   : > { %1247 = shalt.err (!%p1244_p9)
}
  0x42   : > { %1099 = dma.hbm_to_vmem [thread:$0]  (!%p1455_p12), %s1630_s2, 1024, %s1459_s18, [#allocation3], %s1351_s21, %s1351_s21, %s1352_s22  }
  0x43   : > { %s1248_s29 = scalar_lea.hbm %s1632_s4, 1024 }
  0x44   : > { %p1249_p2 = scmp.ne.s32.totalorder %s1632_s4, %s1248_s29  ;;  %p1255_p7 = scmp.lt.u32.totalorder %s1248_s29, %s1632_s4 }
  0x46   : > { %p1251_p3 = pnand %p1249_p2, %p1471_p0 }
  0x48   : > { %p1252_p4 = pneg %p1251_p3 }
  0x4a   : > { %p1257_p8 = pnand %p1255_p7, %p1252_p4 }
  0x4c   : > { %1260 = shalt.err (!%p1257_p8)
}
  0x4d   : > { %s1261_s15 = scalar_lea.vmem %s247_s20, 1024  ;;  %p1269_p6 = scmp.lt.s32.totalorder %s247_s20, %s247_s20 }
  0x4e   : > { %p1262_p11 = scmp.ne.s32.totalorder %s247_s20, %s1261_s15  ;;  %p1270_p9 = scmp.lt.s32.totalorder %s1261_s15, %s1261_s15 }
  0x50   : > { %p1264_p13 = pnand %p1262_p11, %p1471_p0  ;;  %p1271_p5 = por %p1270_p9, %p1269_p6 }
  0x52   : > { %p1265_p1 = pneg %p1264_p13 }
  0x54   : > { %p1272_p10 = pnand %p1271_p5, %p1265_p1 }
  0x56   : > { %1275 = shalt.err (!%p1272_p10)
}
  0x57   : > { %1105 = dma.hbm_to_vmem [thread:$0]  (!%p1455_p12), %s1632_s4, 1024, %s247_s20, [#allocation6], %s1351_s21, %s1351_s21, %s1352_s22  }
  0x58   : > { %p1650_p2 = scmp.ne.s32.totalorder %s1647_s13, 0 }
  0x59   : > { %p1651_p0 = scmp.eq.s32.totalorder (!%p1650_p2), %s1417_s28, 0 }
  0x5a   : > { %277 = sbr.rel (%p1650_p2) target bundleno = 1025 (0x401), region = 48 }
  0x61   : > { %1321 = dma.done.wait (%p1651_p0), [#allocation3], 1024   ;;  %p1652_p3 = pmov %p1651_p0 }
  0x62   : > { %p1653_p5 = pmov %p1651_p0 }
  0x63   : > { %1323 = vsyncadd (%p1652_p3), [#allocation3], 4294966272 }
  0x64   : > { %1325 = dma.done.wait (%p1653_p5), [#allocation6], 2048   ;;  %p1654_p10 = pmov %p1651_p0 }
  0x65   : > { %s937_s16 = sshll.u32 %s1417_s28, 2  ;;  %v1156_v0 = vld [vmem:[%s1629_s1] sm:$0xff]   ;;  %v1157_v1 = vld [vmem:[%s1629_s1 + $0x8] sm:$0xff]   ;;  %vm364_vm0 = vcmask 261120   ;;  %v1162_v6 = vld [vmem:[#allocation2 + $0x10] sm:$0xff]   ;;  %s979_s30 = sshll.u32 %s1417_s28, 9 }
  0x66   : > { %1327 = vsyncadd (%p1654_p10), [#allocation6], 4294965248  ;;  %p318_p4 = scmp.lt.s32.totalorder %s937_s16, 7  ;;  %1014 = vmatprep.subr.bf16.mxu0 %v1156_v0  ;;  %v1160_v3 = vld [vmem:[#allocation2] sm:$0xff]   ;;  %v1161_v4 = vld [vmem:[#allocation2 + $0x8] sm:$0xff]   ;;  %s1585_s29 = scalar_lea.hbm %s1635_s7, %s979_s30 }
  0x67   : > { %1015 = vmatpush3.bf16.msra.mxu0 %v1156_v0  ;;  %1022 = vmatprep.subr.bf16.mxu1 %v1160_v3  ;;  %v1163_v7 = vld [vmem:[#allocation2 + $0x18] sm:$0xff]   ;;  %v1164_v8 = vld [vmem:[#allocation2 + $0x20] sm:$0xff]   ;;  %v1165_v9 = vld [vmem:[#allocation2 + $0x28] sm:$0xff]   ;;  %p1655_p7 = scmp.ne.s32.totalorder %s1645_s11, 0  ;;  %s1353_s14 = smov [#allocation8]  }
  0x68   : > { %s1663_s16 = smov (!%p318_p4, %s937_s16), 7  ;;  %1016 = vmatprep.subr.bf16.mxu0 %v1157_v1  ;;  %1023 = vmatpush3.bf16.msra.mxu1 %v1160_v3  ;;  %v1166_v10 = vld [vmem:[#allocation2 + $0x30] sm:$0xff]   ;;  %v1167_v11 = vld [vmem:[#allocation2 + $0x38] sm:$0xff]   ;;  %v1168_v12 = vld [vmem:[#allocation5] sm:$0xff]   ;;  %s1280_s17 = sshll.u32 %s1353_s14, 4  ;;  %s1281_s17 = int_to_ptr.vmem [resolvable:$false] %s1280_s17 }
  0x69   : > { %s938_s20 = sshll.u32 %s1663_s16, 2  ;;  %1024 = vmatprep.subr.bf16.mxu1 %v1161_v4  ;;  %v939_v14 = vld [vmem:[%s1633_s5] ss:$0 sm:$0xff]  ;;  %v1169_v24 = vld [vmem:[#allocation5 + $0x8] sm:$0xff]   ;;  %v1170_v25 = vld [vmem:[#allocation5 + $0x10] sm:$0xff]   ;;  %s314_s16 = sand.u32 1, %s1338_s25  }
  0x6a   : > { %s321_s21 = scalar_lea.vmem %s1628_s0, %s938_s20  ;;  %v1171_v26 = vld [vmem:[#allocation5 + $0x18] sm:$0xff]   ;;  %v1172_v27 = vld [vmem:[#allocation5 + $0x20] sm:$0xff]   ;;  %v1173_v28 = vld [vmem:[#allocation5 + $0x28] sm:$0xff]   ;;  %s936_s20 = sshll.u32 %s314_s16, 5 }
  0x6b   : > { %v1158_v2 = vld [vmem:[%s321_s21] sm:$0xff]   ;;  %v1159_v5 = vld [vmem:[%s321_s21 + $0x8] sm:$0xff]   ;;  %1017 = vmatpush3.bf16.msra.mxu0 %v1157_v1  ;;  %v1174_v29 = vld [vmem:[#allocation5 + $0x30] sm:$0xff]   ;;  %s316_s21 = scalar_lea.vmem [#allocation8], %s936_s20  ;;  %s1587_s28 = scalar_lea.sflag [#allocation4], %s314_s16 }
  0x6c   : > { %1018 = vmatprep.mubr.msk.bf16.mxu0 %vm364_vm0, %v1158_v2  ;;  %1025 = vmatpush3.bf16.msra.mxu1 %v1161_v4  ;;  %v1175_v30 = vld [vmem:[#allocation5 + $0x38] sm:$0xff]   ;;  %v1176_v31 = vld [vmem:[#allocation7] sm:$0xff]   ;;  %v1177_v32 = vld [vmem:[#allocation7 + $0x8] sm:$0xff]   ;;  %s833_s22 = sshll.u32 %s316_s21, 4  ;;  %s1282_s19 = scalar_lea.vmem %s1281_s17, 1024  ;;  %s1580_s22 = int_to_ptr.vmem [resolvable:$true] %s833_s22 }
  0x6d   : > { %1026 = vmatprep.subr.bf16.mxu1 %v1162_v6  ;;  %1042 = vmatprep.subr.bf16.mxu0 %v1168_v12  ;;  %v1178_v33 = vld [vmem:[#allocation7 + $0x10] sm:$0xff]   ;;  %v1179_v34 = vld [vmem:[#allocation7 + $0x18] sm:$0xff]   ;;  %v1180_v35 = vld [vmem:[#allocation7 + $0x20] sm:$0xff]   ;;  %s1276_s8 = scalar_lea.vmem %s1580_s22, 512  ;;  %p1283_p13 = scmp.lt.s32.totalorder %s1580_s22, %s1281_s17 }
  0x6e   : > { %1019 = vmatmul.mubr.msk.bf16.vlgmr.msra.gmra.mrb[0].mxu0 %vm364_vm0, %v1159_v5  ;;  %v946_v36 = vld [vmem:[%s1633_s5 + $0x1] ss:$0 sm:$0xff]  ;;  %p1277_p12 = scmp.ne.s32.totalorder %s1580_s22, %s1276_s8  ;;  %p1284_p1 = scmp.lt.s32.totalorder %s1282_s19, %s1276_s8 }
  0x6f   : > { %1043 = vmatpush3.bf16.msra.mxu0 %v1168_v12 }
  0x70   : > { %1027 = vmatpush3.bf16.msra.mxu1 %v1162_v6  ;;  %1044 = vmatprep.subr.bf16.mxu0 %v1169_v24  ;;  %p1278_p8 = pnand %p1277_p12, %p1655_p7  ;;  %p1285_p6 = por %p1284_p1, %p1283_p13 }
  0x71   : > { %1028 = vmatprep.subr.bf16.mxu1 %v1163_v7 }
  0x72   : > { %p1279_p11 = pneg %p1278_p8 }
  0x73   : > { %1045 = vmatpush3.bf16.msra.mxu0 %v1169_v24 }
  0x74   : > { %1029 = vmatpush3.bf16.msra.mxu1 %v1163_v7  ;;  %1046 = vmatprep.subr.bf16.mxu0 %v1170_v25  ;;  %v1181_v7 = vld [vmem:[#allocation7 + $0x28] sm:$0xff]   ;;  %p1286_p9 = pnand %p1285_p6, %p1279_p11 }
  0x75   : > { %1030 = vmatprep.subr.bf16.mxu1 %v1164_v8 }
  0x77   : > { %1047 = vmatpush3.bf16.msra.mxu0 %v1170_v25 }
  0x78   : > { %1031 = vmatpush3.bf16.msra.mxu1 %v1164_v8  ;;  %1048 = vmatprep.subr.bf16.mxu0 %v1171_v26  ;;  %v1182_v8 = vld [vmem:[#allocation7 + $0x30] sm:$0xff]  }
  0x79   : > { %1032 = vmatprep.subr.bf16.mxu1 %v1165_v9 }
  0x7b   : > { %1049 = vmatpush3.bf16.msra.mxu0 %v1171_v26 }
  0x7c   : > { %1033 = vmatpush3.bf16.msra.mxu1 %v1165_v9  ;;  %1050 = vmatprep.subr.bf16.mxu0 %v1172_v27  ;;  %v1183_v9 = vld [vmem:[#allocation7 + $0x38] sm:$0xff]  }
  0x7d   : > { %1034 = vmatprep.subr.bf16.mxu1 %v1166_v10 }
  0x7f   : > { %1051 = vmatpush3.bf16.msra.mxu0 %v1172_v27 }
  0x80   : > { %1035 = vmatpush3.bf16.msra.mxu1 %v1166_v10  ;;  %1052 = vmatprep.subr.bf16.mxu0 %v1173_v28  ;;  %v955_v10 = vld [vmem:[%s1633_s5 + $0x2] ss:$0 sm:$0xff] }
  0x81   : > { %1036 = vmatprep.subr.bf16.mxu1 %v1167_v11 }
  0x83   : > { %1053 = vmatpush3.bf16.msra.mxu0 %v1173_v28 }
  0x84   : > { %1037 = vmatpush3.bf16.msra.mxu1 %v1167_v11  ;;  %1054 = vmatprep.subr.bf16.mxu0 %v1174_v29 }
  0x85   : > { %1062 = vmatprep.subr.bf16.mxu1 %v1176_v31 }
  0x87   : > { %1055 = vmatpush3.bf16.msra.mxu0 %v1174_v29 }
  0x88   : > { %1056 = vmatprep.subr.bf16.mxu0 %v1175_v30 }
  0x8b   : > { %1057 = vmatpush3.bf16.msra.mxu0 %v1175_v30  ;;  %v965_v30 = vld [vmem:[%s1634_s6] ss:$0 sm:$0xff] }
 0x141   : > { %v1020_v13 = vpop.f32.mrb[0].mxu0 }
 0x142   : > { %v405_v15 = vpop.f32.mrb[1].mxu0  ;;  %v414_v21 = vadd.f32 %v1020_v13, %v939_v14 }
 0x143   : > { %v1021_v16 = vpop.f32.mrb[2].mxu0  ;;  %v406_v19 = vadd.f32 %v939_v14, %v405_v15 }
 0x144   : > { %v417_v17 = vadd.f32 %v1021_v16, %v939_v14  ;;  %v408_v18 = vpop.f32.mrb[3].mxu0 }
 0x145   : > { %v409_v20 = vadd.f32 %v939_v14, %v408_v18 }
 0x146   : > { %v421_v23 = vpack.c.bf16 %v417_v17, %v414_v21 }
 0x147   : > { %v420_v22 = vpack.c.bf16 %v409_v20, %v406_v19 }
 0x149   : > { %1038 = vmatprep.mubr.bf16.mxu1 %v420_v22 }
 0x14a   : > { %1039 = vmatmul.mubr.bf16.vlgmr.msra.gmra.mrb[0].mxu1 %v421_v23 }
 0x14b   : > { %1063 = vmatpush3.bf16.msra.mxu1 %v1176_v31 }
 0x14c   : > { %1064 = vmatprep.subr.bf16.mxu1 %v1177_v32 }
 0x14f   : > { %1065 = vmatpush3.bf16.msra.mxu1 %v1177_v32 }
 0x150   : > { %1066 = vmatprep.subr.bf16.mxu1 %v1178_v33 }
 0x153   : > { %1067 = vmatpush3.bf16.msra.mxu1 %v1178_v33 }
 0x154   : > { %1068 = vmatprep.subr.bf16.mxu1 %v1179_v34 }
 0x157   : > { %1069 = vmatpush3.bf16.msra.mxu1 %v1179_v34 }
 0x158   : > { %1070 = vmatprep.subr.bf16.mxu1 %v1180_v35 }
 0x15b   : > { %1071 = vmatpush3.bf16.msra.mxu1 %v1180_v35 }
 0x15c   : > { %1072 = vmatprep.subr.bf16.mxu1 %v1181_v7 }
 0x15f   : > { %1073 = vmatpush3.bf16.msra.mxu1 %v1181_v7 }
 0x160   : > { %1074 = vmatprep.subr.bf16.mxu1 %v1182_v8 }
 0x163   : > { %1075 = vmatpush3.bf16.msra.mxu1 %v1182_v8 }
 0x164   : > { %1076 = vmatprep.subr.bf16.mxu1 %v1183_v9 }
 0x167   : > { %1077 = vmatpush3.bf16.msra.mxu1 %v1183_v9 }
 0x21d   : > { %v1040_v37 = vpop.f32.mrb[0].mxu1 }
 0x21e   : > { %v533_v38 = vadd.f32 %v1040_v37, %v946_v36  ;;  %v524_v39 = vpop.f32.mrb[1].mxu1 }
 0x21f   : > { %v525_v40 = vadd.f32 %v946_v36, %v524_v39  ;;  %v1041_v41 = vpop.f32.mrb[2].mxu1 }
 0x220   : > { %v541_v42 = vadd.f32 %v533_v38, %v414_v21  ;;  %v536_v43 = vadd.f32 %v1041_v41, %v946_v36  ;;  %v527_v44 = vpop.f32.mrb[3].mxu1 }
 0x221   : > { %v539_v45 = vadd.f32 %v525_v40, %v406_v19  ;;  %v528_v46 = vadd.f32 %v946_v36, %v527_v44  ;;  %v964_v19 = vld [vmem:[%s1633_s5 + $0x3] ss:$0 sm:$0xff] }
 0x222   : > { %v549_v47 = vmul.f32 0.70710677, %v541_v42  ;;  %v542_v48 = vadd.f32 %v536_v43, %v417_v17  ;;  %v545_v0 = vmul.f32 0.5, %v541_v42 }
 0x223   : > { %v547_v49 = vmul.f32 0.70710677, %v539_v45  ;;  %v540_v50 = vadd.f32 %v528_v46, %v409_v20  ;;  %v543_v61 = vmul.f32 0.5, %v539_v45 }
 0x224   : > { %1184 = verf.f32 %v549_v47  ;;  %v550_v51 = vmul.f32 0.70710677, %v542_v48  ;;  %v546_v59 = vmul.f32 0.5, %v542_v48 }
 0x225   : > { %1186 = verf.f32 %v547_v49  ;;  %v548_v52 = vmul.f32 0.70710677, %v540_v50  ;;  %v544_v62 = vmul.f32 0.5, %v540_v50 }
 0x226   : > { %1188 = verf.f32 %v550_v51 }
 0x227   : > { %1190 = verf.f32 %v548_v52 }
 0x22e   : > { %v1185_v53 = vpop.eup %1184 }
 0x22f   : > { %v1187_v54 = vpop.eup %1186  ;;  %v557_v58 = vadd.f32 1.0, %v1185_v53 }
 0x230   : > { %v1189_v55 = vpop.eup %1188  ;;  %v555_v56 = vadd.f32 1.0, %v1187_v54 }
 0x231   : > { %v1191_v57 = vpop.eup %1190  ;;  %v558_v60 = vadd.f32 1.0, %v1189_v55  ;;  %v561_v4 = vmul.f32 %v557_v58, %v545_v0 }
 0x232   : > { %v556_v63 = vadd.f32 1.0, %v1191_v57  ;;  %v559_v2 = vmul.f32 %v555_v56, %v543_v61 }
 0x233   : > { %v562_v1 = vmul.f32 %v558_v60, %v546_v59 }
 0x234   : > { %v560_v3 = vmul.f32 %v556_v63, %v544_v62 }
 0x235   : > { %v564_v6 = vpack.c.bf16 %v562_v1, %v561_v4 }
 0x236   : > { %v563_v5 = vpack.c.bf16 %v560_v3, %v559_v2 }
 0x238   : > { %1058 = vmatprep.mubr.bf16.mxu0 %v563_v5 }
 0x239   : > { %1059 = vmatmul.mubr.bf16.vlgmr.msra.gmra.mrb[4].mxu0 %v564_v6 }
 0x30c   : > { %v1060_v11 = vpop.f32.mrb[4].mxu0 }
 0x30d   : > { %v676_v12 = vadd.f32 %v1060_v11, %v955_v10  ;;  %v667_v13 = vpop.f32.mrb[5].mxu0 }
 0x30e   : > { %v668_v14 = vadd.f32 %v955_v10, %v667_v13  ;;  %v1061_v15 = vpop.f32.mrb[6].mxu0 }
 0x30f   : > { %v684_v16 = vadd.f32 %v676_v12, %v561_v4  ;;  %v679_v17 = vadd.f32 %v1061_v15, %v955_v10  ;;  %v670_v18 = vpop.f32.mrb[7].mxu0 }
 0x310   : > { %v682_v20 = vadd.f32 %v668_v14, %v559_v2  ;;  %v671_v21 = vadd.f32 %v955_v10, %v670_v18 }
 0x311   : > { %v685_v22 = vadd.f32 %v679_v17, %v562_v1  ;;  %v692_v24 = vmul.f32 %v964_v19, %v684_v16 }
 0x312   : > { %v683_v23 = vadd.f32 %v671_v21, %v560_v3  ;;  %v690_v26 = vmul.f32 %v964_v19, %v682_v20 }
 0x313   : > { %v693_v25 = vmul.f32 %v964_v19, %v685_v22 }
 0x314   : > { %v691_v27 = vmul.f32 %v964_v19, %v683_v23 }
 0x315   : > { %v695_v28 = vpack.c.bf16 %v693_v25, %v692_v24 }
 0x316   : > { %v694_v29 = vpack.c.bf16 %v691_v27, %v690_v26 }
 0x318   : > { %1078 = vmatprep.mubr.bf16.mxu1 %v694_v29 }
 0x319   : > { %1079 = vmatmul.mubr.bf16.vlgmr.msra.gmra.mrb[4].mxu1 %v695_v28 }
 0x3ec   : > { %v1080_v31 = vpop.f32.mrb[4].mxu1 }
 0x3ed   : > { %v809_v32 = vadd.f32 %v1080_v31, %v965_v30  ;;  %v800_v33 = vpop.f32.mrb[5].mxu1 }
 0x3ee   : > { %v801_v34 = vadd.f32 %v965_v30, %v800_v33  ;;  %v1081_v35 = vpop.f32.mrb[6].mxu1 }
 0x3ef   : > { %817 = vst [vmem:[%s316_s21 + $0x10] sm:$0xff] %v809_v32  ;;  %v812_v36 = vadd.f32 %v1081_v35, %v965_v30  ;;  %v803_v37 = vpop.f32.mrb[7].mxu1 }
 0x3f0   : > { %815 = vst [vmem:[%s316_s21] sm:$0xff] %v801_v34  ;;  %v804_v38 = vadd.f32 %v965_v30, %v803_v37 }
 0x3f1   : > { %818 = vst [vmem:[%s316_s21 + $0x18] sm:$0xff] %v812_v36 }
 0x3f2   : > { %816 = vst [vmem:[%s316_s21 + $0x8] sm:$0xff] %v804_v38 }
 0x3f3   : > { %1289 = shalt.err (!%p1286_p9)
}
 0x3f4   : > { %s1290_s15 = scalar_lea.hbm %s1585_s29, 512  ;;  %s1294_s16 = scalar_lea.hbm %s1635_s7, 1024 }
 0x3f5   : > { %p1291_p2 = scmp.ne.s32.totalorder %s1585_s29, %s1290_s15  ;;  %p1295_p5 = scmp.lt.u32.totalorder %s1585_s29, %s1635_s7 }
 0x3f6   : > { %p1296_p10 = scmp.lt.u32.totalorder %s1294_s16, %s1290_s15  ;;  %p1298_p12 = scmp.lt.u32.totalorder %s1290_s15, %s1585_s29 }
 0x3f7   : > { %p1292_p0 = pnand %p1291_p2, %p1655_p7 }
 0x3f8   : > { %p1297_p4 = por %p1296_p10, %p1295_p5 }
 0x3f9   : > { %p1293_p3 = pneg %p1292_p0 }
 0x3fa   : > { %p1299_p8 = por %p1298_p12, %p1297_p4 }
 0x3fc   : > { %p1300_p11 = pnand %p1299_p8, %p1293_p3 }
 0x3fe   : > { %1303 = shalt.err (!%p1300_p11)
}
 0x3ff   : > { %s1354_s13 = smov 128   ;;  %s1355_s21 = smov 8  }
 0x400   : > { %1094 = dma.vmem_to_hbm [thread:$0]  (%p1655_p7), %s1580_s22, 512, %s1585_s29, %s1587_s28, %s1354_s13, %s1354_s13, %s1355_s21  }
 0x401 PF: > { %p1116_p13 = scmp.ge.s32.totalorder %s1346_s27, 2  ;;  %s848_s30 = sand.u32 1, %s1334_s24  }
 0x402   : > { %p1656_p1 = scmp.ne.s32.totalorder %s1646_s12, 0  ;;  %s849_s10 = scalar_lea.sflag [#allocation4], %s848_s30 }
 0x404   : > { %p1107_p6 = pnand %p1116_p13, %p1656_p1 }
 0x406   : > { %1329 = dma.done.wait (!%p1107_p6), %s849_s10, 512  }
 0x407   : > { %1331 = vsyncadd (!%p1107_p6), %s849_s10, 4294966784  ;;  %s1657_s27 = sld [smem:[#allocation13_spill]]  ;;  %s1658_s23 = sld [smem:[#allocation12_spill]] }
 0x408   : > { %s1659_s26 = sld [smem:[#allocation14_spill]]  ;;  %s1660_s24 = smov %s1338_s25 }
 0x40d   : > { %p19_p9 = scmp.ge.s32.totalorder %s1657_s27, 4   ;;  %s1661_s25 = smov %s1658_s23 }
 0x40f   :  { %21 = sbr.rel (!%p19_p9) target bundleno = 5 (0x5), region = 96 }
 0x416   :  { %854 = vsyncpa [#allocation3], 1 }
 0x417   :  { %856 = vsyncpa [#allocation3 + $0x1], 1 }
 0x418   :  { %857 = vsyncpa [#allocation6], 1 }
 0x419   :  { %858 = vsyncpa [#allocation4], 1 }
 0x41a   :  { %860 = vsyncpa [#allocation4 + $0x1], 1 }

</bundles_post_ra>
